<compile_context>
chip_gen: v7x
topology: tpu7x:2x2x1
jax: 0.10.0
libtpu: 0.0.40
codegen_flags: <defaults>
</compile_context>

<pallas_src>
import functools

import jax
import jax.numpy as jnp
from jax.experimental import pallas as pl
from jax.experimental.pallas import tpu as pltpu


def _clip_loss_kernel(t_ref, img_hbm_ref, o_ref,
                      img_t_ref, img_raw_ref, inv_norm_ref,
                      col_sum_ref, acc_ref, dma_sem,
                      *, inv_temp, batch, mxu_dtype):
    i = pl.program_id(0)
    n_tiles = pl.num_programs(0)
    tm = t_ref.shape[0]

    eps2 = jnp.float32(1e-24)          # F.normalize eps=1e-12, squared
    c = jnp.float32(inv_temp)

    @pl.when(i == 0)
    def _stage():
        # One-time staging: single VMEM copy of the image (no double-buffering
        # of a constant operand), f32 normalization, transposed + cast layout
        # for a native (TM, D) @ (D, B) MXU feed on every step.
        cp = pltpu.make_async_copy(img_hbm_ref, img_raw_ref, dma_sem)
        cp.start()
        cp.wait()
        im = img_raw_ref[...]
        im_inv = jax.lax.rsqrt(
            jnp.maximum(jnp.sum(im * im, axis=1, keepdims=True), eps2))
        inv_norm_ref[...] = im_inv                              # (B, 1)
        img_t_ref[...] = jnp.transpose(im * im_inv).astype(mxu_dtype)  # (D, B)
        col_sum_ref[...] = jnp.zeros_like(col_sum_ref)
        acc_ref[...] = jnp.zeros_like(acc_ref)

    # Text row tile: normalize in f32, fold 1/temperature, cast for the MXU.
    t = t_ref[...].astype(jnp.float32)
    t_inv = jax.lax.rsqrt(
        jnp.maximum(jnp.sum(t * t, axis=1, keepdims=True), eps2))
    t_scaled = t * (t_inv * c)                                   # (TM, D) f32
    t_mxu = t_scaled.astype(mxu_dtype)

    # sim tile = (t_norm / T) @ i_norm.T as a plain matmul against the staged
    # transposed image (f32 accumulation on the MXU).
    sim = jax.lax.dot_general(
        t_mxu, img_t_ref[...],
        dimension_numbers=(((1,), (0,)), ((), ())),
        preferred_element_type=jnp.float32)                      # (TM, B)

    # Diagonal entries of the global sim matrix for these rows, taken from the
    # resident raw image scratch (full f32 accuracy, no extra DMA, no masks).
    row0 = pl.multiple_of(i * tm, tm)
    imt = img_raw_ref[pl.ds(row0, tm), :]                        # (TM, D) f32
    inv_t = inv_norm_ref[pl.ds(row0, tm), :]                     # (TM, 1) f32
    diag = jnp.sum(t_scaled * imt, axis=1, keepdims=True) * inv_t  # (TM, 1)

    # Single exp pass: |sim| <= 1/temperature = c (up to MXU-dtype rounding),
    # so the constant shift keeps exp(sim - c) bounded near 1.
    p = jnp.exp(sim - c)                                         # (TM, B)

    # Row-wise logsumexp for cross_entropy(sim, labels).
    lse_r = jnp.log(jnp.sum(p, axis=1, keepdims=True)) + c       # (TM, 1)

    # sum_i lse_r[i] - 2 * sum_i sim[i,i]; the factor 2 covers the diagonal
    # term of both cross-entropy directions.
    acc_ref[...] += (jnp.sum(lse_r, keepdims=True)
                     - 2.0 * jnp.sum(diag, keepdims=True))       # (1, 1)

    # Column-wise running exp-sum for cross_entropy(sim.T, labels).
    col_sum_ref[...] += jnp.sum(p, axis=0, keepdims=True)        # (1, B)

    @pl.when(i == n_tiles - 1)
    def _finalize():
        lse_c = jnp.log(col_sum_ref[...]) + c                    # (1, B)
        total = acc_ref[...] + jnp.sum(lse_c, keepdims=True)     # (1, 1)
        o_ref[...] = total * jnp.float32(0.5 / batch)


def _pick_row_tile(batch, cap=256):
    """Largest multiple-of-8 divisor of `batch` that is <= cap, else batch."""
    best = None
    t = 8
    while t <= min(batch, cap):
        if batch % t == 0:
            best = t
        t += 8
    return best if best is not None else batch


def clip_loss(text_features, image_features, temperature=0.2,
              row_tile_cap=256, mxu_dtype=jnp.bfloat16):
    """Pallas TPU implementation of CLIPLoss.forward.

    row_tile_cap: 256 is v7x-safe; raise to 512 on v6e (128 MiB VMEM), keep
    128-256 on v5e.  mxu_dtype=jnp.float32 gives a bit-faithful (1e-5) match
    to the f32 reference at reduced MXU throughput.
    """
    assert text_features.shape == image_features.shape
    assert text_features.ndim == 2
    B, D = text_features.shape
    text_features = text_features.astype(jnp.float32)
    image_features = image_features.astype(jnp.float32)
    tm = _pick_row_tile(B, cap=row_tile_cap)
    mxu_bytes = jnp.dtype(mxu_dtype).itemsize

    kernel = functools.partial(
        _clip_loss_kernel, inv_temp=1.0 / float(temperature), batch=B,
        mxu_dtype=mxu_dtype)

    # VMEM budget from actual residency (+ headroom).
    resident = (B * D * 4             # raw image (single-buffered scratch)
                + B * D * mxu_bytes   # normalized transposed image
                + 2 * tm * D * 4      # double-buffered text tiles
                + 4 * tm * B * 4      # sim / p temporaries + headroom
                + 3 * B * 4 + (1 << 16))
    vmem_limit = min(max(int(1.25 * resident), 32 * 1024 * 1024),
                     64 * 1024 * 1024)

    cost = pl.CostEstimate(
        flops=2 * B * B * D + 8 * B * D,
        transcendentals=B * B + 4 * B,
        bytes_accessed=2 * B * D * 4 + 4)

    out = pl.pallas_call(
        kernel,
        out_shape=jax.ShapeDtypeStruct((1, 1), jnp.float32),
        grid_spec=pltpu.PrefetchScalarGridSpec(
            num_scalar_prefetch=0,
            grid=(B // tm,),
            in_specs=[
                pl.BlockSpec((tm, D), lambda i: (i, 0)),   # text row tile
                pl.BlockSpec(memory_space=pl.ANY),         # full image (HBM)
            ],
            out_specs=pl.BlockSpec((1, 1), lambda i: (0, 0)),
            scratch_shapes=[
                pltpu.VMEM((D, B), mxu_dtype),      # normalized image, transposed
                pltpu.VMEM((B, D), jnp.float32),    # raw image (single copy)
                pltpu.VMEM((B, 1), jnp.float32),    # image inverse norms
                pltpu.VMEM((1, B), jnp.float32),    # column exp-sum accumulator
                pltpu.VMEM((1, 1), jnp.float32),    # scalar loss accumulator
                pltpu.SemaphoreType.DMA,            # image staging DMA
            ],
        ),
        compiler_params=pltpu.CompilerParams(
            dimension_semantics=("arbitrary",),
            vmem_limit_bytes=vmem_limit),
        cost_estimate=cost,
    )(text_features, image_features)
    return out[0, 0]


def _clip_loss_ref(text_features, image_features, temperature=0.2):
    """Pure-JAX reference mirroring the PyTorch module."""
    eps = 1e-12
    t = text_features / jnp.maximum(
        jnp.linalg.norm(text_features, axis=1, keepdims=True), eps)
    im = image_features / jnp.maximum(
        jnp.linalg.norm(image_features, axis=1, keepdims=True), eps)
    sim = (t @ im.T) / temperature
    B = sim.shape[0]
    labels = jnp.arange(B)

    def ce(logits):
        lse = jax.nn.logsumexp(logits, axis=1)
        return jnp.mean(lse - logits[jnp.arange(B), labels])

    return 0.5 * (ce(sim) + ce(sim.T))


if __name__ == "__main__":
    key = jax.random.PRNGKey(0)
    k1, k2, k3, k4 = jax.random.split(key, 4)

    # Small demo shape (single row tile).
    B, D = 8, 32
    tf1 = jax.random.normal(k1, (B, D), dtype=jnp.float32)
    if1 = jax.random.normal(k2, (B, D), dtype=jnp.float32)
    ref1 = _clip_loss_ref(tf1, if1, temperature=0.2)

    # f32-MXU path: tight match to the reference.
    loss_f32 = jax.block_until_ready(
        clip_loss(tf1, if1, temperature=0.2, mxu_dtype=jnp.float32))
    assert jnp.allclose(loss_f32, ref1, atol=3e-5, rtol=3e-5), (loss_f32, ref1)

    # Default bf16-MXU path (fast); ~1e-3 relative accuracy is expected.
    loss_bf16 = jax.block_until_ready(clip_loss(tf1, if1, temperature=0.2))
    assert jnp.allclose(loss_bf16, ref1, atol=5e-2, rtol=5e-2), (loss_bf16, ref1)

    # Multi-tile path (grid of 2 row tiles) to exercise the staged image and
    # carried accumulators.
    B2, D2 = 16, 32
    tf2 = jax.random.normal(k3, (B2, D2), dtype=jnp.float32)
    if2 = jax.random.normal(k4, (B2, D2), dtype=jnp.float32)
    ref2 = _clip_loss_ref(tf2, if2, temperature=0.2)
    loss2 = jax.block_until_ready(
        clip_loss(tf2, if2, temperature=0.2, row_tile_cap=8))
    assert jnp.allclose(loss2, ref2, atol=5e-2, rtol=5e-2), (loss2, ref2)

    print("KERNEL_OK")
</pallas_src>

<mosaic_0001>
module attributes {stable_mosaic.version = 11 : i64} {
  func.func @_clip_loss_kernel(%arg0: i32, %arg1: memref<8x32xf32, #tpu.memory_space<vmem>>, %arg2: memref<8x32xf32, #tpu.memory_space<any>>, %arg3: memref<1x1xf32, #tpu.memory_space<vmem>>, %arg4: memref<32x8xf32, #tpu.memory_space<vmem>>, %arg5: memref<8x32xf32, #tpu.memory_space<vmem>>, %arg6: memref<8x1xf32, #tpu.memory_space<vmem>>, %arg7: memref<1x8xf32, #tpu.memory_space<vmem>>, %arg8: memref<1x1xf32, #tpu.memory_space<vmem>>, %arg9: memref<!tpu.dma_semaphore, #tpu.memory_space<semaphore_mem>>) attributes {dimension_semantics = [#tpu.dimension_semantics<arbitrary>], iteration_bounds = array<i64: 1>, scalar_prefetch = 0 : i64, scratch_operands = 6 : i64, tpu.core_type = #tpu.core_type<tc>, window_params = [{transform_indices = @transform_0, window_bounds = array<i64: 8, 32>}, {}, {pipeline_mode = #tpu.pipeline_mode<synchronous>, transform_indices = @transform_2, window_bounds = array<i64: 1, 1>}]} {
    %c0_i32 = arith.constant 0 : i32
    %0 = arith.cmpi eq, %arg0, %c0_i32 : i32
    %1 = arith.extui %0 : i1 to i32
    %cst = arith.constant 1.000000e-24 : f32
    %c0_i32_0 = arith.constant 0 : i32
    %2 = arith.cmpi ne, %1, %c0_i32_0 : i32
    scf.if %2 {
      tpu.enqueue_dma source(%arg2 : memref<8x32xf32, #tpu.memory_space<any>>) target(%arg5 : memref<8x32xf32, #tpu.memory_space<vmem>>) target_semaphore(%arg9 : memref<!tpu.dma_semaphore, #tpu.memory_space<semaphore_mem>>)
      tpu.wait_dma2 semaphore(%arg9 : memref<!tpu.dma_semaphore, #tpu.memory_space<semaphore_mem>>) src(%arg2 : memref<8x32xf32, #tpu.memory_space<any>>) dst(%arg5 : memref<8x32xf32, #tpu.memory_space<vmem>>)
      %c0_29 = arith.constant 0 : index
      %c0_30 = arith.constant 0 : index
      %58 = vector.load %arg5[%c0_29, %c0_30] : memref<8x32xf32, #tpu.memory_space<vmem>>, vector<8x32xf32>
      %59 = arith.mulf %58, %58 : vector<8x32xf32>
      %cst_31 = arith.constant dense<0.000000e+00> : vector<8xf32>
      %60 = vector.multi_reduction <add>, %59, %cst_31 [1] : vector<8x32xf32> to vector<8xf32>
      %61 = vector.shape_cast %60 : vector<8xf32> to vector<8x1xf32>
      %62 = vector.broadcast %cst : f32 to vector<8x1xf32>
      %63 = arith.maximumf %61, %62 : vector<8x1xf32>
      %64 = math.rsqrt %63 : vector<8x1xf32>
      %c0_32 = arith.constant 0 : index
      %c0_33 = arith.constant 0 : index
      %65 = vector.load %arg6[%c0_32, %c0_33] : memref<8x1xf32, #tpu.memory_space<vmem>>, vector<8x1xf32>
      tpu.vector_store %arg6[%c0_32, %c0_33], %64 {strides = array<i32>} : memref<8x1xf32, #tpu.memory_space<vmem>>, vector<8x1xf32>,
      %66 = vector.broadcast %64 : vector<8x1xf32> to vector<8x32xf32>
      %67 = arith.mulf %58, %66 : vector<8x32xf32>
      %68 = tpu.transpose %67, [1, 0] : vector<8x32xf32> -> vector<32x8xf32>
      %c0_34 = arith.constant 0 : index
      %c0_35 = arith.constant 0 : index
      %69 = vector.load %arg4[%c0_34, %c0_35] : memref<32x8xf32, #tpu.memory_space<vmem>>, vector<32x8xf32>
      tpu.vector_store %arg4[%c0_34, %c0_35], %68 {strides = array<i32>} : memref<32x8xf32, #tpu.memory_space<vmem>>, vector<32x8xf32>,
      %cst_36 = arith.constant 0.000000e+00 : f32
      %70 = vector.broadcast %cst_36 : f32 to vector<1x8xf32>
      %c0_37 = arith.constant 0 : index
      %c0_38 = arith.constant 0 : index
      %71 = vector.load %arg7[%c0_37, %c0_38] : memref<1x8xf32, #tpu.memory_space<vmem>>, vector<1x8xf32>
      tpu.vector_store %arg7[%c0_37, %c0_38], %70 {strides = array<i32>} : memref<1x8xf32, #tpu.memory_space<vmem>>, vector<1x8xf32>,
      %cst_39 = arith.constant 0.000000e+00 : f32
      %72 = vector.broadcast %cst_39 : f32 to vector<1x1xf32>
      %c0_40 = arith.constant 0 : index
      %c0_41 = arith.constant 0 : index
      %73 = vector.load %arg8[%c0_40, %c0_41] : memref<1x1xf32, #tpu.memory_space<vmem>>, vector<1x1xf32>
      tpu.vector_store %arg8[%c0_40, %c0_41], %72 {strides = array<i32>} : memref<1x1xf32, #tpu.memory_space<vmem>>, vector<1x1xf32>,
    } else {
    }
    %c0 = arith.constant 0 : index
    %c0_1 = arith.constant 0 : index
    %3 = vector.load %arg1[%c0, %c0_1] : memref<8x32xf32, #tpu.memory_space<vmem>>, vector<8x32xf32>
    %4 = arith.mulf %3, %3 : vector<8x32xf32>
    %cst_2 = arith.constant dense<0.000000e+00> : vector<8xf32>
    %5 = vector.multi_reduction <add>, %4, %cst_2 [1] : vector<8x32xf32> to vector<8xf32>
    %6 = vector.shape_cast %5 : vector<8xf32> to vector<8x1xf32>
    %cst_3 = arith.constant 1.000000e-24 : f32
    %7 = vector.broadcast %cst_3 : f32 to vector<8x1xf32>
    %8 = arith.maximumf %6, %7 : vector<8x1xf32>
    %9 = math.rsqrt %8 : vector<8x1xf32>
    %cst_4 = arith.constant 5.000000e+00 : f32
    %10 = vector.broadcast %cst_4 : f32 to vector<8x1xf32>
    %11 = arith.mulf %9, %10 : vector<8x1xf32>
    %12 = vector.broadcast %11 : vector<8x1xf32> to vector<8x32xf32>
    %13 = arith.mulf %3, %12 : vector<8x32xf32>
    %c0_5 = arith.constant 0 : index
    %c0_6 = arith.constant 0 : index
    %14 = vector.load %arg4[%c0_5, %c0_6] : memref<32x8xf32, #tpu.memory_space<vmem>>, vector<32x8xf32>
    %cst_7 = arith.constant dense<0.000000e+00> : vector<8x8xf32>
    %15 = tpu.matmul %13, %14, %cst_7 {dimension_numbers = #tpu.dot_dimension_numbers<[1], [0], [0], [1], [0, 0, 1, 1], [], []>} : vector<8x32xf32>, vector<32x8xf32>, vector<8x8xf32> -> vector<8x8xf32>
    %c8_i32 = arith.constant 8 : i32
    %16 = arith.muli %arg0, %c8_i32 : i32
    %17 = tpu.assume_multiple %16, 8 : i32
    %18 = arith.index_cast %17 : i32 to index
    %c0_8 = arith.constant 0 : index
    %19 = vector.load %arg5[%18, %c0_8] : memref<8x32xf32, #tpu.memory_space<vmem>>, vector<8x32xf32>
    %20 = arith.index_cast %17 : i32 to index
    %c0_9 = arith.constant 0 : index
    %21 = vector.load %arg6[%20, %c0_9] : memref<8x1xf32, #tpu.memory_space<vmem>>, vector<8x1xf32>
    %22 = arith.mulf %13, %19 : vector<8x32xf32>
    %cst_10 = arith.constant dense<0.000000e+00> : vector<8xf32>
    %23 = vector.multi_reduction <add>, %22, %cst_10 [1] : vector<8x32xf32> to vector<8xf32>
    %24 = vector.shape_cast %23 : vector<8xf32> to vector<8x1xf32>
    %25 = arith.mulf %24, %21 : vector<8x1xf32>
    %cst_11 = arith.constant 5.000000e+00 : f32
    %26 = vector.broadcast %cst_11 : f32 to vector<8x8xf32>
    %27 = arith.subf %15, %26 : vector<8x8xf32>
    %28 = math.exp %27 : vector<8x8xf32>
    %cst_12 = arith.constant dense<0.000000e+00> : vector<8xf32>
    %29 = vector.multi_reduction <add>, %28, %cst_12 [1] : vector<8x8xf32> to vector<8xf32>
    %30 = vector.shape_cast %29 : vector<8xf32> to vector<8x1xf32>
    %31 = math.log %30 : vector<8x1xf32>
    %cst_13 = arith.constant 5.000000e+00 : f32
    %32 = vector.broadcast %cst_13 : f32 to vector<8x1xf32>
    %33 = arith.addf %31, %32 : vector<8x1xf32>
    %c0_14 = arith.constant 0 : index
    %c0_15 = arith.constant 0 : index
    %34 = vector.load %arg8[%c0_14, %c0_15] : memref<1x1xf32, #tpu.memory_space<vmem>>, vector<1x1xf32>
    %35 = vector.shape_cast %33 : vector<8x1xf32> to vector<1x8x1xf32>
    %cst_16 = arith.constant dense<0.000000e+00> : vector<1xf32>
    %36 = vector.multi_reduction <add>, %35, %cst_16 [1, 2] : vector<1x8x1xf32> to vector<1xf32>
    %37 = vector.shape_cast %36 : vector<1xf32> to vector<1x1x1xf32>
    %38 = vector.extract %37[0, 0, 0] : f32 from vector<1x1x1xf32>
    %39 = vector.broadcast %38 : f32 to vector<1x1xf32>
    %40 = vector.shape_cast %25 : vector<8x1xf32> to vector<1x8x1xf32>
    %cst_17 = arith.constant dense<0.000000e+00> : vector<1xf32>
    %41 = vector.multi_reduction <add>, %40, %cst_17 [1, 2] : vector<1x8x1xf32> to vector<1xf32>
    %42 = vector.shape_cast %41 : vector<1xf32> to vector<1x1x1xf32>
    %43 = vector.extract %42[0, 0, 0] : f32 from vector<1x1x1xf32>
    %44 = vector.broadcast %43 : f32 to vector<1x1xf32>
    %cst_18 = arith.constant 2.000000e+00 : f32
    %45 = vector.broadcast %cst_18 : f32 to vector<1x1xf32>
    %46 = arith.mulf %45, %44 : vector<1x1xf32>
    %47 = arith.subf %39, %46 : vector<1x1xf32>
    %48 = arith.addf %34, %47 : vector<1x1xf32>
    %c0_19 = arith.constant 0 : index
    %c0_20 = arith.constant 0 : index
    %49 = vector.load %arg8[%c0_19, %c0_20] : memref<1x1xf32, #tpu.memory_space<vmem>>, vector<1x1xf32>
    tpu.vector_store %arg8[%c0_19, %c0_20], %48 {strides = array<i32>} : memref<1x1xf32, #tpu.memory_space<vmem>>, vector<1x1xf32>,
    %c0_21 = arith.constant 0 : index
    %c0_22 = arith.constant 0 : index
    %50 = vector.load %arg7[%c0_21, %c0_22] : memref<1x8xf32, #tpu.memory_space<vmem>>, vector<1x8xf32>
    %cst_23 = arith.constant dense<0.000000e+00> : vector<8xf32>
    %51 = vector.multi_reduction <add>, %28, %cst_23 [0] : vector<8x8xf32> to vector<8xf32>
    %52 = vector.shape_cast %51 : vector<8xf32> to vector<1x8xf32>
    %53 = arith.addf %50, %52 : vector<1x8xf32>
    %c0_24 = arith.constant 0 : index
    %c0_25 = arith.constant 0 : index
    %54 = vector.load %arg7[%c0_24, %c0_25] : memref<1x8xf32, #tpu.memory_space<vmem>>, vector<1x8xf32>
    tpu.vector_store %arg7[%c0_24, %c0_25], %53 {strides = array<i32>} : memref<1x8xf32, #tpu.memory_space<vmem>>, vector<1x8xf32>,
    %c0_i32_26 = arith.constant 0 : i32
    %55 = arith.cmpi eq, %arg0, %c0_i32_26 : i32
    %56 = arith.extui %55 : i1 to i32
    %cst_27 = arith.constant 5.000000e+00 : f32
    %c0_i32_28 = arith.constant 0 : i32
    %57 = arith.cmpi ne, %56, %c0_i32_28 : i32
    scf.if %57 {
      %c0_29 = arith.constant 0 : index
      %c0_30 = arith.constant 0 : index
      %58 = vector.load %arg7[%c0_29, %c0_30] : memref<1x8xf32, #tpu.memory_space<vmem>>, vector<1x8xf32>
      %59 = math.log %58 : vector<1x8xf32>
      %60 = vector.broadcast %cst_27 : f32 to vector<1x8xf32>
      %61 = arith.addf %59, %60 : vector<1x8xf32>
      %c0_31 = arith.constant 0 : index
      %c0_32 = arith.constant 0 : index
      %62 = vector.load %arg8[%c0_31, %c0_32] : memref<1x1xf32, #tpu.memory_space<vmem>>, vector<1x1xf32>
      %63 = vector.shape_cast %61 : vector<1x8xf32> to vector<1x1x8xf32>
      %cst_33 = arith.constant dense<0.000000e+00> : vector<1xf32>
      %64 = vector.multi_reduction <add>, %63, %cst_33 [1, 2] : vector<1x1x8xf32> to vector<1xf32>
      %65 = vector.shape_cast %64 : vector<1xf32> to vector<1x1x1xf32>
      %66 = vector.extract %65[0, 0, 0] : f32 from vector<1x1x1xf32>
      %67 = vector.broadcast %66 : f32 to vector<1x1xf32>
      %68 = arith.addf %62, %67 : vector<1x1xf32>
      %cst_34 = arith.constant 6.250000e-02 : f32
      %69 = vector.broadcast %cst_34 : f32 to vector<1x1xf32>
      %70 = arith.mulf %68, %69 : vector<1x1xf32>
      %c0_35 = arith.constant 0 : index
      %c0_36 = arith.constant 0 : index
      %71 = vector.load %arg3[%c0_35, %c0_36] : memref<1x1xf32, #tpu.memory_space<vmem>>, vector<1x1xf32>
      tpu.vector_store %arg3[%c0_35, %c0_36], %70 {strides = array<i32>} : memref<1x1xf32, #tpu.memory_space<vmem>>, vector<1x1xf32>,
    } else {
    }
    return
  }
  func.func @transform_0(%arg0: i32) -> (i32, i32) {
    %c0_i32 = arith.constant 0 : i32
    %c0_i32_0 = arith.constant 0 : i32
    return %arg0, %c0_i32 : i32, i32
  }
  func.func @transform_2(%arg0: i32) -> (i32, i32) {
    %c0_i32 = arith.constant 0 : i32
    %c0_i32_0 = arith.constant 0 : i32
    %c0_i32_1 = arith.constant 0 : i32
    return %c0_i32, %c0_i32_0 : i32, i32
  }
}

</mosaic_0001>

<bundles_post_ra>
// kernel: tpu_custom_call.1
= control target key start
LH: loop header
LB: loop body
LE: loop exit
PB: predicated region body
PF: predicated region fallthrough
CT: control target
= control target key end

     0   :  { %7 = vsyncpa [#allocation9], 0  ;;  %s475_s0 = inlined_call_operand.hbm [shape: f32[8,32], index: 0, kind: input, shape index: {}]   ;;  %s476_s1 = inlined_call_operand.hbm [shape: f32[8,32], index: 1, kind: input, shape index: {}]   ;;  %s477_s2 = inlined_call_operand.hbm [shape: f32[1,1], index: 2, kind: output, shape index: {}]  }
   0x1   :  { %8 = vsyncpa [#allocation10], 0  ;;  %s400_s9 = smov [#allocation8]   ;;  %s328_s13 = scalar_lea.hbm %s475_s0, 128 }
   0x2   :  { %s15_s10 = sshll.u32 %s400_s9, 4  ;;  %p329_p0 = scmp.ne.s32.totalorder %s475_s0, %s328_s13  ;;  %s16_s10 = int_to_ptr.vmem [resolvable:$true] %s15_s10 }
   0x3   :  { %p332_p1 = scmp.lt.u32.totalorder %s328_s13, %s475_s0 }
   0x5   :  { %p334_p2 = pnand %p332_p1, %p329_p0 }
   0x7   :  { %337 = shalt.err (!%p334_p2)
}
   0x8   :  { %s338_s18 = scalar_lea.vmem %s16_s10, 128  ;;  %p343_p4 = scmp.lt.s32.totalorder %s16_s10, %s16_s10 }
   0x9   :  { %p339_p3 = scmp.ne.s32.totalorder %s16_s10, %s338_s18  ;;  %p344_p5 = scmp.lt.s32.totalorder %s338_s18, %s338_s18 }
   0xb   :  { %p345_p6 = por %p344_p5, %p343_p4 }
   0xd   :  { %p346_p7 = pnand %p345_p6, %p339_p3 }
   0xf   :  { %349 = shalt.err (!%p346_p7)
}
  0x10   :  { %18 = dma.hbm_to_vmem [thread:$0]  %s475_s0, 128, %s16_s10, [#allocation9]  }
  0x11   :  { %394 = dma.done.wait [#allocation9], 128  }
  0x12   :  { %395 = vsyncadd [#allocation9], 4294967168  ;;  %s401_s21 = smov [#allocation3]   ;;  %s350_s25 = scalar_lea.hbm %s476_s1, 128 }
  0x13   :  { %s33_s22 = sshll.u32 %s401_s21, 4  ;;  %p351_p8 = scmp.ne.s32.totalorder %s476_s1, %s350_s25  ;;  %s34_s22 = int_to_ptr.vmem [resolvable:$true] %s33_s22 }
  0x14   :  { %p354_p9 = scmp.lt.u32.totalorder %s350_s25, %s476_s1 }
  0x16   :  { %p356_p10 = pnand %p354_p9, %p351_p8 }
  0x18   :  { %359 = shalt.err (!%p356_p10)  }
  0x19   :  { %s360_s0 = scalar_lea.vmem %s34_s22, 128  ;;  %p365_p12 = scmp.lt.s32.totalorder %s34_s22, %s34_s22 }
  0x1a   :  { %p361_p11 = scmp.ne.s32.totalorder %s34_s22, %s360_s0  ;;  %p366_p13 = scmp.lt.s32.totalorder %s360_s0, %s360_s0 }
  0x1c   :  { %p367_p0 = por %p366_p13, %p365_p12 }
  0x1e   :  { %p368_p1 = pnand %p367_p0, %p361_p11 }
  0x20   :  { %371 = shalt.err (!%p368_p1)  }
  0x21   :  { %36 = dma.hbm_to_vmem [thread:$0]  %s476_s1, 128, %s34_s22, [#allocation7] }
  0x22   :  { %396 = dma.done.wait [#allocation7], 128 }
  0x23   :  { %397 = vsyncadd [#allocation7], 4294967168  ;;  %v40_v0 = vld [vmem:[#allocation3] sm:$0xff]  ;;  %vm42_vm0 = vcmask 261120   ;;  %v92_v1 = vld [vmem:[#allocation8] sm:$0xff]  ;;  %vm48_vm1 = vcmask 7168  }
  0x24   :  { %v41_v2 = vmul.f32 %v40_v0, %v40_v0  ;;  %v93_v3 = vmul.f32 %v92_v1, %v92_v1  ;;  %v402_v17 = vmov 0.0|0.0   ;;  %vm90_vm2 = vcmask 0   ;;  %s405_s6 = smov [#allocation11]  }
  0x25   :  { %300 = vmatprep.subr.bf16.mxu0 %v402_v17  ;;  %v403_v18 = vmov 0.0   ;;  %vm404_vm3 = vmmov 0   ;;  %vm83_vm4 = vcmask 64512   ;;  %vm88_vm5 = vcmask 57344   ;;  %s266_s7 = sshll.u32 %s405_s6, 4  ;;  %s267_s7 = int_to_ptr.vmem [resolvable:$true] %s266_s7 }
  0x26   :  { %v43_v4 = vsel %vm42_vm0, %v41_v2, 0.0  ;;  %v95_v5 = vsel %vm42_vm0, %v93_v3, 0.0  ;;  %91 = vst.msk [vmem:[#allocation6] sm:$0x1] %vm90_vm2, %v403_v18  ;;  %297 = vmatprep.mubr.msk.f32.mxu0 %vm404_vm3, %v403_v18  ;;  %s372_s8 = scalar_lea.vmem %s267_s7, 16  ;;  %s376_s9 = scalar_lea.vmem %s267_s7, 32 }
  0x27   :  { %44 = vadd.xlane.f32.xlu0 %v43_v4  ;;  %89 = vst.msk [vmem:[#allocation5] sm:$0x1] %vm88_vm5, %v403_v18  ;;  %p373_p2 = scmp.ne.s32.totalorder %s267_s7, %s372_s8  ;;  %p377_p3 = scmp.lt.s32.totalorder %s267_s7, %s267_s7 }
  0x28   :  { %p378_p4 = scmp.lt.s32.totalorder %s376_s9, %s372_s8 }
  0x2a   :  { %p379_p5 = por %p378_p4, %p377_p3 }
  0x2b   :  { %96 = vadd.xlane.f32.xlu0 %v95_v5 }
  0x2c   :  { %p380_p6 = pnand %p379_p5, %p373_p2 }
  0x2e   :  { %v228_v40 = vld [vmem:[#allocation5] sm:$0x1] }
  0xb4   :  { %v45_v6 = vpop.xlane.xlu0 %44 }
  0xb5   :  { %v46_v7 = vmax.f32 %v45_v6, 1e-24 }
  0xb7   :  { %318 = vrsqrt.f32 %v46_v7 }
  0xb8   :  { %v97_v8 = vpop.xlane.xlu0 %96 }
  0xb9   :  { %v98_v9 = vmax.f32 %v97_v8, 1e-24 }
  0xbb   :  { %320 = vrsqrt.f32 %v98_v9 }
  0xc1   :  { %v319_v10 = vpop.eup %318 }
  0xc2   :  { %v50_v11 = vmul.f32 %v319_v10, %v40_v0  ;;  %49 = vst.msk [vmem:[#allocation4] sm:$0xff] %vm48_vm1, %v319_v10 }
  0xc4   :  { %51 = vxpose.xlu1.b32.start.end [1/1] (short) (narrow) %v50_v11, 32 }
  0xc5   :  { %v321_v12 = vpop.eup %320 }
  0xc6   :  { %v100_v13 = vmul.f32 5.0, %v321_v12 }
  0xc8   :  { %v101_v14 = vmul.f32 %v100_v13, %v92_v1 }
  0xc9   :  { %v183_v50 = vld [vmem:[#allocation4] sm:$0xff] }
  0xca   :  { %v184_v15 = vmul.f32 %v101_v14, %v40_v0 }
  0xcc   :  { %v185_v16 = vsel %vm42_vm0, %v184_v15, 0.0 }
  0xcd   :  { %186 = vadd.xlane.f32.xlu0 %v185_v16 }
 0x144   :  { %v67_v19 = vpop.trf.xlu1 }
 0x145   :  { %84 = vst.msk [vmem:[#allocation2] sm:$0xff] %vm83_vm4, %v67_v19 }
 0x148   :  { %v68_v20 = vpop.trf.xlu1 }
 0x149   :  { %85 = vst.msk [vmem:[#allocation2 + $0x8] sm:$0xff] %vm83_vm4, %v68_v20 }
 0x14c   :  { %v69_v21 = vpop.trf.xlu1  ;;  %v102_v23 = vld [vmem:[#allocation2] sm:$0xff] }
 0x14d   :  { %86 = vst.msk [vmem:[#allocation2 + $0x10] sm:$0xff] %vm83_vm4, %v69_v21 }
 0x150   :  { %v70_v22 = vpop.trf.xlu1  ;;  %v103_v24 = vld [vmem:[#allocation2 + $0x8] sm:$0xff] }
 0x151   :  { %87 = vst.msk [vmem:[#allocation2 + $0x18] sm:$0xff] %vm83_vm4, %v70_v22  ;;  %v301_v25 = vpack.c.bf16 %v103_v24, %v102_v23 }
 0x153   :  { %302 = vmatpush3.bf16.msra.mxu0 %v301_v25 }
 0x154   :  { %303 = vmatprep.subr.bf16.mxu0 %v402_v17  ;;  %v104_v26 = vld [vmem:[#allocation2 + $0x10] sm:$0xff] }
 0x155   :  { %v199_v17 = vld [vmem:[#allocation6] sm:$0x1] }
 0x158   :  { %v105_v27 = vld [vmem:[#allocation2 + $0x18] sm:$0xff] }
 0x159   :  { %v304_v28 = vpack.c.bf16 %v105_v27, %v104_v26 }
 0x15a   :  { %v187_v48 = vpop.xlane.xlu0 %186 }
 0x15b   :  { %305 = vmatpush3.bf16.msra.mxu0 %v304_v28  ;;  %v188_v51 = vmul.f32 %v187_v48, %v183_v50 }
 0x15d   :  { %v212_v54 = vsel %vm48_vm1, %v188_v51, 0.0 }
 0x15e   :  { %298 = vmatmul.mubr.msk.f32.vlgmr.msra.gmra.mrb[0].mxu0 %vm42_vm0, %v101_v14 }
 0x231   :  { %v175_v29 = vpop.f32.mrb[0].mxu0 }
 0x232   :  { %v282_v30 = vadd.f32 -5.0, %v175_v29  ;;  %v299_v31 = vpop.f32.mrb[1].mxu0 }
 0x234   :  { %v190_v32 = vmul.f32 1.442695, %v282_v30 }
 0x236   :  { %322 = vpow2.f32 %v190_v32 }
 0x240   :  { %v323_v33 = vpop.eup %322 }
 0x241   :  { %v193_v34 = vsel %vm83_vm4, %v323_v33, 0.0 }
 0x242   :  { %194 = vadd.xlane.f32.xlu1 %v193_v34  ;;  %v229_v35 = vrot.slane %v193_v34, 4 }
 0x244   :  { %v230_v36 = vadd.f32 %v229_v35, %v193_v34 }
 0x246   :  { %v231_v37 = vrot.slane %v230_v36, 2 }
 0x248   :  { %v232_v38 = vadd.f32 %v231_v37, %v230_v36 }
 0x24a   :  { %v233_v39 = vrot.slane %v232_v38, 1 }
 0x24c   :  { %v234_v41 = vadd.f32 %v233_v39, %v232_v38 }
 0x24e   :  { %v235_v42 = vadd.f32 %v234_v41, %v228_v40 }
 0x250   :  { %237 = vst.msk [vmem:[#allocation5] sm:$0x1] %vm88_vm5, %v235_v42 }
 0x257   :  { %v241_v44 = vld [vmem:[#allocation5] sm:$0x1] }
 0x2cf   :  { %v195_v43 = vpop.xlane.xlu1 %194 }
 0x2d0   :  { %324 = vlog2.f32 %v195_v43 }
 0x2d1   :  { %326 = vlog2.f32 %v241_v44 }
 0x2da   :  { %v325_v45 = vpop.eup %324 }
 0x2db   :  { %v197_v46 = vmul.f32 0.6931472, %v325_v45  ;;  %v327_v47 = vpop.eup %326 }
 0x2dc   :  { %v243_v53 = vmul.f32 0.6931472, %v327_v47 }
 0x2dd   :  { %v198_v49 = vadd.f32 5.0, %v197_v46 }
 0x2de   :  { %v244_v55 = vadd.f32 5.0, %v243_v53 }
 0x2df   :  { %v201_v52 = vsel %vm48_vm1, %v198_v49, 0.0 }
 0x2e0   :  { %202 = vadd.xlane.f32.xlu0 %v201_v52  ;;  %v246_v56 = vsel %vm88_vm5, %v244_v55, 0.0 }
 0x2e4   :  { %213 = vadd.xlane.f32.xlu0 %v212_v54 }
 0x2e8   :  { %247 = vadd.xlane.f32.xlu0 %v246_v56 }
 0x36d   :  { %v203_v57 = vpop.xlane.xlu0 %202 }
 0x36e   :  { %v204_v58 = vrot.slane %v203_v57, 4 }
 0x370   :  { %v205_v59 = vadd.f32 %v204_v58, %v203_v57 }
 0x371   :  { %v214_v60 = vpop.xlane.xlu0 %213 }
 0x372   :  { %v206_v61 = vrot.slane %v205_v59, 2  ;;  %v215_v62 = vrot.slane %v214_v60, 4 }
 0x374   :  { %v216_v63 = vadd.f32 %v215_v62, %v214_v60  ;;  %v207_v0 = vadd.f32 %v206_v61, %v205_v59 }
 0x375   :  { %v248_v1 = vpop.xlane.xlu0 %247 }
 0x376   :  { %v217_v2 = vrot.slane %v216_v63, 2  ;;  %v249_v3 = vrot.slane %v248_v1, 4  ;;  %v208_v4 = vrot.slane %v207_v0, 1 }
 0x378   :  { %v250_v5 = vadd.f32 %v249_v3, %v248_v1  ;;  %v209_v6 = vadd.f32 %v208_v4, %v207_v0  ;;  %v218_v7 = vadd.f32 %v217_v2, %v216_v63 }
 0x37a   :  { %v251_v8 = vrot.slane %v250_v5, 2  ;;  %306 = vpush %v209_v6  ;;  %v219_v9 = vrot.slane %v218_v7, 1 }
 0x37c   :  { %v252_v10 = vadd.f32 %v251_v8, %v250_v5  ;;  %v220_v11 = vadd.f32 %v219_v9, %v218_v7 }
 0x37e   :  { %308 = vpush %v220_v11  ;;  %v253_v12 = vrot.slane %v252_v10, 1 }
 0x380   :  { %v254_v13 = vadd.f32 %v253_v12, %v252_v10 }
 0x382   :  { %310 = vpush %v254_v13 }
 0x3ab   :  { %s307_s1 = spop %306 }
 0x3ac   :  { %v211_v16 = vstv %s307_s1 }
 0x3af   :  { %s309_s4 = spop %308 }
 0x3b0   :  { %v222_v14 = vstv %s309_s4 }
 0x3b1   :  { %v223_v15 = vmul.f32 2.0, %v222_v14 }
 0x3b3   :  { %v224_v18 = vsub.f32 %v211_v16, %v223_v15  ;;  %s311_s5 = spop %310 }
 0x3b4   :  { %v256_v21 = vstv %s311_s5 }
 0x3b5   :  { %v225_v19 = vadd.f32 %v224_v18, %v199_v17 }
 0x3b7   :  { %227 = vst.msk [vmem:[#allocation6] sm:$0x1] %vm90_vm2, %v225_v19 }
 0x3be   :  { %v245_v20 = vld [vmem:[#allocation6] sm:$0x1] }
 0x3bf   :  { %v257_v22 = vadd.f32 %v256_v21, %v245_v20 }
 0x3c1   :  { %v258_v23 = vmul.f32 0.0625, %v257_v22 }
 0x3c3   :  { %259 = vst.msk [vmem:[#allocation11] sm:$0x1] %vm90_vm2, %v258_v23 }
 0x3c4   :  { %383 = shalt.err (!%p380_p6)
}
 0x3c5   :  { %s384_s12 = scalar_lea.hbm %s477_s2, 16 }
 0x3c6   :  { %p385_p7 = scmp.ne.s32.totalorder %s477_s2, %s384_s12  ;;  %p388_p8 = scmp.lt.u32.totalorder %s384_s12, %s477_s2 }
 0x3c8   :  { %p390_p9 = pnand %p388_p8, %p385_p7 }
 0x3ca   :  { %393 = shalt.err (!%p390_p9)
}
 0x3cb   :  { %269 = dma.vmem_to_hbm [thread:$0]  %s267_s7, 16, %s477_s2, [#allocation10]  }
 0x3cc   :  { %398 = dma.done.wait [#allocation10], 16  }
 0x3cd   :  { %399 = vsyncadd [#allocation10], 4294967280 }
 0x3ce   :  { %273 = vsyncpa [#allocation9], 1 }
 0x3cf   :  { %274 = vsyncpa [#allocation10], 1 }
 0x3d0   :  { %275 = vsyncmov [#allocation7] }
 0x3d3   :  { %s276_s19 = vpop.sfrf %275 }
 0x3d4   :  { %p283_p10 = scmp.ne.s32.totalorder %s276_s19, 0 }
 0x3d6   :  { %280 = shalt.err (%p283_p10)  }

</bundles_post_ra>
